<compile_context>
chip_gen: v7x
topology: tpu7x:2x2x1
jax: 0.10.0
libtpu: 0.0.40
codegen_flags: <defaults>
</compile_context>

<pallas_src>
import functools

import jax
import jax.numpy as jnp
from jax.experimental import pallas as pl
from jax.experimental.pallas import tpu as pltpu


def _round_up(x, m):
    return (x + m - 1) // m * m


def _vmem_limit_bytes(tile_bytes):
    # Double-buffered tiles + headroom, clamped to stay safe on v7x (64 MiB
    # physical VMEM per TensorCore).
    return int(min(max(2 * tile_bytes + (4 << 20), 16 << 20), 32 << 20))


# ----------------------------- Pallas kernels ----------------------------- #
def _matmul_bias_act_kernel(x_ref, w_ref, b_ref, o_ref, *, apply_relu):
    # bf16 tiles, f32 accumulation on the MXU; bias + ReLU in f32.
    acc = jnp.dot(x_ref[...], w_ref[...], preferred_element_type=jnp.float32)
    acc = acc + b_ref[...]                       # (TM, N) + (1, N) broadcast
    if apply_relu:
        acc = jnp.maximum(acc, 0.0)
    o_ref[...] = acc.astype(o_ref.dtype)


def _fused_fc_kernel(x_ref, w1_ref, b1_ref, w2_ref, b2_ref, o_ref):
    # fc1 + ReLU + fc2 fused; the 512-wide hidden activation never leaves VMEM.
    h = jnp.dot(x_ref[...], w1_ref[...], preferred_element_type=jnp.float32)
    h = jnp.maximum(h + b1_ref[...], 0.0)
    out = jnp.dot(h.astype(w2_ref.dtype), w2_ref[...],
                  preferred_element_type=jnp.float32)
    o_ref[...] = (out + b2_ref[...]).astype(o_ref.dtype)


# --------------------------- Tiled linear layer ---------------------------- #
def pallas_linear_padded(x, w_pad, b_pad, *, relu, out_dtype, tm_max=512):
    """y = x @ w_pad + b_pad (optional ReLU), M-tiled & pipelined.

    x:     (M, K)       any float dtype (cast to bf16; K zero-padded to K_pad)
    w_pad: (K_pad, N_pad) bf16, K_pad/N_pad multiples of 128
    b_pad: (1, N_pad)   f32
    Returns (M_pad, N_pad); caller slices off row/lane padding.
    """
    M, K = x.shape
    K_pad, N_pad = w_pad.shape
    x = x.astype(jnp.bfloat16)
    M_pad = _round_up(M, 8)
    if (M_pad != M) or (K_pad != K):
        x = jnp.pad(x, ((0, M_pad - M), (0, K_pad - K)))

    tm = min(tm_max, M_pad)
    grid = (pl.cdiv(M_pad, tm),)

    out_itemsize = jnp.dtype(out_dtype).itemsize
    tile_bytes = (tm * K_pad * 2 + K_pad * N_pad * 2
                  + tm * N_pad * out_itemsize + N_pad * 4)
    cost = pl.CostEstimate(
        flops=2 * M_pad * K_pad * N_pad,
        transcendentals=0,
        bytes_accessed=(M_pad * K_pad * 2 + K_pad * N_pad * 2
                        + M_pad * N_pad * out_itemsize + N_pad * 4))

    kernel = functools.partial(_matmul_bias_act_kernel, apply_relu=relu)
    return pl.pallas_call(
        kernel,
        out_shape=jax.ShapeDtypeStruct((M_pad, N_pad), out_dtype),
        grid=grid,
        in_specs=[
            pl.BlockSpec((tm, K_pad), lambda i: (i, 0)),     # activations stream
            pl.BlockSpec((K_pad, N_pad), lambda i: (0, 0)),  # weights resident
            pl.BlockSpec((1, N_pad), lambda i: (0, 0)),      # bias resident
        ],
        out_specs=pl.BlockSpec((tm, N_pad), lambda i: (i, 0)),
        compiler_params=pltpu.CompilerParams(
            dimension_semantics=("parallel",),
            vmem_limit_bytes=_vmem_limit_bytes(tile_bytes)),
        cost_estimate=cost,
    )(x, w_pad, b_pad)


# ----------------------------- Fused FC head ------------------------------- #
def fused_fc_pallas(x, fcp, *, tb_max=256):
    """q = relu(x @ w1 + b1) @ w2 + b2 in a single pallas_call."""
    B, feat = x.shape
    feat_pad, h_dim = fcp["w1"].shape
    _, a_pad = fcp["w2"].shape
    x = x.astype(jnp.bfloat16)
    B_pad = _round_up(B, 8)
    if (B_pad != B) or (feat_pad != feat):
        x = jnp.pad(x, ((0, B_pad - B), (0, feat_pad - feat)))

    tb = min(tb_max, B_pad)
    grid = (pl.cdiv(B_pad, tb),)
    tile_bytes = (tb * feat_pad * 2 + feat_pad * h_dim * 2 + h_dim * a_pad * 2
                  + tb * a_pad * 4 + (h_dim + a_pad) * 4)
    cost = pl.CostEstimate(
        flops=2 * B_pad * feat_pad * h_dim + 2 * B_pad * h_dim * a_pad,
        transcendentals=0,
        bytes_accessed=(B_pad * feat_pad * 2 + feat_pad * h_dim * 2
                        + h_dim * a_pad * 2 + B_pad * a_pad * 4
                        + (h_dim + a_pad) * 4))

    return pl.pallas_call(
        _fused_fc_kernel,
        out_shape=jax.ShapeDtypeStruct((B_pad, a_pad), jnp.float32),
        grid=grid,
        in_specs=[
            pl.BlockSpec((tb, feat_pad), lambda i: (i, 0)),
            pl.BlockSpec((feat_pad, h_dim), lambda i: (0, 0)),
            pl.BlockSpec((1, h_dim), lambda i: (0, 0)),
            pl.BlockSpec((h_dim, a_pad), lambda i: (0, 0)),
            pl.BlockSpec((1, a_pad), lambda i: (0, 0)),
        ],
        out_specs=pl.BlockSpec((tb, a_pad), lambda i: (i, 0)),
        compiler_params=pltpu.CompilerParams(
            dimension_semantics=("parallel",),
            vmem_limit_bytes=_vmem_limit_bytes(tile_bytes)),
        cost_estimate=cost,
    )(x, fcp["w1"], fcp["b1"], fcp["w2"], fcp["b2"])


# --------------------------- Conv via im2col ------------------------------- #
def _im2col_nhwc(x_nhwc, kh, kw, stride):
    """(N, H, W, C) -> patch matrix (N*OH*OW, kh*kw*C) in (kh, kw, c) order."""
    n, h, w, c = x_nhwc.shape
    oh = (h - kh) // stride + 1
    ow = (w - kw) // stride + 1
    cols = []
    for i in range(kh):
        for j in range(kw):
            sl = x_nhwc[:, i:i + stride * (oh - 1) + 1:stride,
                           j:j + stride * (ow - 1) + 1:stride, :]
            cols.append(sl)                              # (N, OH, OW, C)
    patches = jnp.stack(cols, axis=3)                    # (N, OH, OW, kh*kw, C)
    return patches.reshape(n * oh * ow, kh * kw * c), oh, ow


def conv2d_nhwc_pallas(x_nhwc, cp, *, relu=True):
    """Conv2d (valid padding) + optional ReLU, NHWC in / NHWC out (bf16)."""
    n = x_nhwc.shape[0]
    patches, oh, ow = _im2col_nhwc(x_nhwc, cp["kh"], cp["kw"], cp["stride"])
    m = patches.shape[0]
    y = pallas_linear_padded(patches, cp["w"], cp["b"], relu=relu,
                             out_dtype=jnp.bfloat16)
    y = y[:m, :cp["cout"]]                               # drop row / lane padding
    return y.reshape(n, oh, ow, cp["cout"])


# ------------------------------- CnnDQN ------------------------------------ #
def _conv_out(size, k, s):
    return (size - k) // s + 1


def feature_size(input_shape):
    _, h, w = input_shape
    h1, w1 = _conv_out(h, 8, 4), _conv_out(w, 8, 4)
    h2, w2 = _conv_out(h1, 4, 2), _conv_out(w1, 4, 2)
    h3, w3 = _conv_out(h2, 3, 1), _conv_out(w2, 3, 1)
    return 64 * h3 * w3


def init_params(key, input_shape, num_actions):
    """PyTorch-like uniform(-1/sqrt(fan_in), 1/sqrt(fan_in)) init (f32)."""
    c, _, _ = input_shape

    def uinit(k, shape, fan_in):
        bound = 1.0 / (fan_in ** 0.5)
        return jax.random.uniform(k, shape, jnp.float32, -bound, bound)

    ks = jax.random.split(key, 10)
    feat = feature_size(input_shape)
    return {
        "conv1_w": uinit(ks[0], (32, c, 8, 8), c * 8 * 8),
        "conv1_b": uinit(ks[1], (32,), c * 8 * 8),
        "conv2_w": uinit(ks[2], (64, 32, 4, 4), 32 * 4 * 4),
        "conv2_b": uinit(ks[3], (64,), 32 * 4 * 4),
        "conv3_w": uinit(ks[4], (64, 64, 3, 3), 64 * 3 * 3),
        "conv3_b": uinit(ks[5], (64,), 64 * 3 * 3),
        # FC weights stored as (in, out); equivalent to torch's (out, in).T
        "fc1_w": uinit(ks[6], (feat, 512), feat),
        "fc1_b": uinit(ks[7], (512,), feat),
        "fc2_w": uinit(ks[8], (512, num_actions), 512),
        "fc2_b": uinit(ks[9], (num_actions,), 512),
    }


def prepare_params(params, input_shape, num_actions):
    """One-time conversion to kernel-friendly layout: bf16, lane/K padding,
    (kh,kw,ci,co) weight matrices, fc1 rows permuted to the NHWC flatten."""
    _, h, w = input_shape
    h1, w1 = _conv_out(h, 8, 4), _conv_out(w, 8, 4)
    h2, w2 = _conv_out(h1, 4, 2), _conv_out(w1, 4, 2)
    h3, w3 = _conv_out(h2, 3, 1), _conv_out(w2, 3, 1)

    def conv_prep(w_oihw, b, stride):
        cout, cin, kh, kw = w_oihw.shape
        k = kh * kw * cin
        k_pad = _round_up(k, 128)
        n_pad = _round_up(cout, 128)
        w_mat = jnp.transpose(w_oihw, (2, 3, 1, 0)).reshape(k, cout)
        w_mat = jnp.pad(w_mat, ((0, k_pad - k), (0, n_pad - cout)))
        b_mat = jnp.pad(b, (0, n_pad - cout)).astype(jnp.float32).reshape(1, n_pad)
        return dict(w=w_mat.astype(jnp.bfloat16), b=b_mat,
                    kh=kh, kw=kw, stride=stride, cout=cout)

    feat = 64 * h3 * w3
    feat_pad = _round_up(feat, 128)
    # fc1_w rows are in PyTorch NCHW-flatten order (c, h, w); permute once to
    # the NHWC-flatten order (h, w, c) used by the NHWC activation path.
    fc1_w = params["fc1_w"].reshape(64, h3, w3, 512)
    fc1_w = jnp.transpose(fc1_w, (1, 2, 0, 3)).reshape(feat, 512)
    fc1_w = jnp.pad(fc1_w, ((0, feat_pad - feat), (0, 0))).astype(jnp.bfloat16)

    a_pad = _round_up(num_actions, 128)
    fc2_w = jnp.pad(params["fc2_w"],
                    ((0, 0), (0, a_pad - num_actions))).astype(jnp.bfloat16)
    fc2_b = jnp.pad(params["fc2_b"],
                    (0, a_pad - num_actions)).astype(jnp.float32).reshape(1, a_pad)

    return {
        "conv1": conv_prep(params["conv1_w"], params["conv1_b"], 4),
        "conv2": conv_prep(params["conv2_w"], params["conv2_b"], 2),
        "conv3": conv_prep(params["conv3_w"], params["conv3_b"], 1),
        "fc": {
            "w1": fc1_w,
            "b1": params["fc1_b"].astype(jnp.float32).reshape(1, 512),
            "w2": fc2_w,
            "b2": fc2_b,
            "num_actions": num_actions,
        },
    }


def cnn_dqn_forward(prep, x_nchw):
    # NCHW f32 (PyTorch convention) -> NHWC bf16 once; stay NHWC end-to-end.
    x = jnp.transpose(x_nchw, (0, 2, 3, 1)).astype(jnp.bfloat16)
    x = conv2d_nhwc_pallas(x, prep["conv1"])
    x = conv2d_nhwc_pallas(x, prep["conv2"])
    x = conv2d_nhwc_pallas(x, prep["conv3"])
    n = x.shape[0]
    x = x.reshape(n, -1)          # NHWC flatten; fc1_w rows already permuted
    q = fused_fc_pallas(x, prep["fc"])
    return q[:n, :prep["fc"]["num_actions"]]


# ------------------------- Pure-JAX f32 reference -------------------------- #
def _reference_forward(params, x_nchw):
    def conv(x, w, b, stride):
        y = jax.lax.conv_general_dilated(
            x, w, window_strides=(stride, stride), padding="VALID",
            dimension_numbers=("NCHW", "OIHW", "NCHW"))
        return jax.nn.relu(y + b[None, :, None, None])

    x = conv(x_nchw, params["conv1_w"], params["conv1_b"], 4)
    x = conv(x, params["conv2_w"], params["conv2_b"], 2)
    x = conv(x, params["conv3_w"], params["conv3_b"], 1)
    x = x.reshape(x.shape[0], -1)
    x = jax.nn.relu(x @ params["fc1_w"] + params["fc1_b"])
    return x @ params["fc2_w"] + params["fc2_b"]


if __name__ == "__main__":
    key = jax.random.PRNGKey(0)
    input_shape = (4, 36, 36)     # small stand-in for Atari (4, 84, 84)
    num_actions = 6
    batch = 2

    pkey, xkey = jax.random.split(key)
    params = init_params(pkey, input_shape, num_actions)
    prep = prepare_params(params, input_shape, num_actions)
    x = jax.random.uniform(xkey, (batch,) + input_shape, jnp.float32)

    fwd = jax.jit(functools.partial(cnn_dqn_forward, prep))
    q_values = fwd(x)
    jax.block_until_ready(q_values)

    assert q_values.shape == (batch, num_actions), q_values.shape
    assert q_values.dtype == jnp.float32

    # bf16 compute -> loose tolerance vs the f32 reference.
    ref = _reference_forward(params, x)
    assert bool(jnp.allclose(q_values, ref, atol=0.1, rtol=0.1)), (
        "max abs err = %f" % float(jnp.max(jnp.abs(q_values - ref))))

    print("KERNEL_OK")
</pallas_src>

<mosaic_0001>
module attributes {stable_mosaic.version = 11 : i64} {
  func.func @_matmul_bias_act_kernel(%arg0: i32, %arg1: memref<128x256xbf16, #tpu.memory_space<vmem>>, %arg2: memref<256x128xbf16, #tpu.memory_space<vmem>>, %arg3: memref<1x128xf32, #tpu.memory_space<vmem>>, %arg4: memref<128x128xbf16, #tpu.memory_space<vmem>>) attributes {dimension_semantics = [#tpu.dimension_semantics<parallel>], iteration_bounds = array<i64: 1>, scalar_prefetch = 0 : i64, scratch_operands = 0 : i64, tpu.core_type = #tpu.core_type<tc>, window_params = [{transform_indices = @transform_0, window_bounds = array<i64: 128, 256>}, {pipeline_mode = #tpu.pipeline_mode<synchronous>, transform_indices = @transform_1, window_bounds = array<i64: 256, 128>}, {pipeline_mode = #tpu.pipeline_mode<synchronous>, transform_indices = @transform_2, window_bounds = array<i64: 1, 128>}, {transform_indices = @transform_3, window_bounds = array<i64: 128, 128>}]} {
    %c0 = arith.constant 0 : index
    %c0_0 = arith.constant 0 : index
    %0 = vector.load %arg1[%c0, %c0_0] : memref<128x256xbf16, #tpu.memory_space<vmem>>, vector<128x256xbf16>
    %c0_1 = arith.constant 0 : index
    %c0_2 = arith.constant 0 : index
    %1 = vector.load %arg2[%c0_1, %c0_2] : memref<256x128xbf16, #tpu.memory_space<vmem>>, vector<256x128xbf16>
    %cst = arith.constant dense<0.000000e+00> : vector<128x128xf32>
    %2 = tpu.matmul %0, %1, %cst {dimension_numbers = #tpu.dot_dimension_numbers<[1], [0], [0], [1], [0, 0, 1, 1], [], []>} : vector<128x256xbf16>, vector<256x128xbf16>, vector<128x128xf32> -> vector<128x128xf32>
    %c0_3 = arith.constant 0 : index
    %c0_4 = arith.constant 0 : index
    %3 = vector.load %arg3[%c0_3, %c0_4] : memref<1x128xf32, #tpu.memory_space<vmem>>, vector<1x128xf32>
    %4 = vector.broadcast %3 : vector<1x128xf32> to vector<128x128xf32>
    %5 = arith.addf %2, %4 : vector<128x128xf32>
    %cst_5 = arith.constant 0.000000e+00 : f32
    %6 = vector.broadcast %cst_5 : f32 to vector<128x128xf32>
    %7 = arith.maximumf %5, %6 : vector<128x128xf32>
    %8 = arith.truncf %7 : vector<128x128xf32> to vector<128x128xbf16>
    %c0_6 = arith.constant 0 : index
    %c0_7 = arith.constant 0 : index
    %9 = vector.load %arg4[%c0_6, %c0_7] : memref<128x128xbf16, #tpu.memory_space<vmem>>, vector<128x128xbf16>
    tpu.vector_store %arg4[%c0_6, %c0_7], %8 {strides = array<i32>} : memref<128x128xbf16, #tpu.memory_space<vmem>>, vector<128x128xbf16>,
    return
  }
  func.func @transform_0(%arg0: i32) -> (i32, i32) {
    %c0_i32 = arith.constant 0 : i32
    %c0_i32_0 = arith.constant 0 : i32
    return %arg0, %c0_i32 : i32, i32
  }
  func.func @transform_1(%arg0: i32) -> (i32, i32) {
    %c0_i32 = arith.constant 0 : i32
    %c0_i32_0 = arith.constant 0 : i32
    %c0_i32_1 = arith.constant 0 : i32
    return %c0_i32, %c0_i32_0 : i32, i32
  }
  func.func @transform_2(%arg0: i32) -> (i32, i32) {
    %c0_i32 = arith.constant 0 : i32
    %c0_i32_0 = arith.constant 0 : i32
    %c0_i32_1 = arith.constant 0 : i32
    return %c0_i32, %c0_i32_0 : i32, i32
  }
  func.func @transform_3(%arg0: i32) -> (i32, i32) {
    %c0_i32 = arith.constant 0 : i32
    %c0_i32_0 = arith.constant 0 : i32
    return %arg0, %c0_i32 : i32, i32
  }
}

module attributes {stable_mosaic.version = 11 : i64} {
  func.func @_matmul_bias_act_kernel(%arg0: i32, %arg1: memref<24x512xbf16, #tpu.memory_space<vmem>>, %arg2: memref<512x128xbf16, #tpu.memory_space<vmem>>, %arg3: memref<1x128xf32, #tpu.memory_space<vmem>>, %arg4: memref<24x128xbf16, #tpu.memory_space<vmem>>) attributes {dimension_semantics = [#tpu.dimension_semantics<parallel>], iteration_bounds = array<i64: 1>, scalar_prefetch = 0 : i64, scratch_operands = 0 : i64, tpu.core_type = #tpu.core_type<tc>, window_params = [{transform_indices = @transform_0, window_bounds = array<i64: 24, 512>}, {pipeline_mode = #tpu.pipeline_mode<synchronous>, transform_indices = @transform_1, window_bounds = array<i64: 512, 128>}, {pipeline_mode = #tpu.pipeline_mode<synchronous>, transform_indices = @transform_2, window_bounds = array<i64: 1, 128>}, {transform_indices = @transform_3, window_bounds = array<i64: 24, 128>}]} {
    %c0 = arith.constant 0 : index
    %c0_0 = arith.constant 0 : index
    %0 = vector.load %arg1[%c0, %c0_0] : memref<24x512xbf16, #tpu.memory_space<vmem>>, vector<24x512xbf16>
    %c0_1 = arith.constant 0 : index
    %c0_2 = arith.constant 0 : index
    %1 = vector.load %arg2[%c0_1, %c0_2] : memref<512x128xbf16, #tpu.memory_space<vmem>>, vector<512x128xbf16>
    %cst = arith.constant dense<0.000000e+00> : vector<24x128xf32>
    %2 = tpu.matmul %0, %1, %cst {dimension_numbers = #tpu.dot_dimension_numbers<[1], [0], [0], [1], [0, 0, 1, 1], [], []>} : vector<24x512xbf16>, vector<512x128xbf16>, vector<24x128xf32> -> vector<24x128xf32>
    %c0_3 = arith.constant 0 : index
    %c0_4 = arith.constant 0 : index
    %3 = vector.load %arg3[%c0_3, %c0_4] : memref<1x128xf32, #tpu.memory_space<vmem>>, vector<1x128xf32>
    %4 = vector.broadcast %3 : vector<1x128xf32> to vector<24x128xf32>
    %5 = arith.addf %2, %4 : vector<24x128xf32>
    %cst_5 = arith.constant 0.000000e+00 : f32
    %6 = vector.broadcast %cst_5 : f32 to vector<24x128xf32>
    %7 = arith.maximumf %5, %6 : vector<24x128xf32>
    %8 = arith.truncf %7 : vector<24x128xf32> to vector<24x128xbf16>
    %c0_6 = arith.constant 0 : index
    %c0_7 = arith.constant 0 : index
    %9 = vector.load %arg4[%c0_6, %c0_7] : memref<24x128xbf16, #tpu.memory_space<vmem>>, vector<24x128xbf16>
    tpu.vector_store %arg4[%c0_6, %c0_7], %8 {strides = array<i32>} : memref<24x128xbf16, #tpu.memory_space<vmem>>, vector<24x128xbf16>,
    return
  }
  func.func @transform_0(%arg0: i32) -> (i32, i32) {
    %c0_i32 = arith.constant 0 : i32
    %c0_i32_0 = arith.constant 0 : i32
    return %arg0, %c0_i32 : i32, i32
  }
  func.func @transform_1(%arg0: i32) -> (i32, i32) {
    %c0_i32 = arith.constant 0 : i32
    %c0_i32_0 = arith.constant 0 : i32
    %c0_i32_1 = arith.constant 0 : i32
    return %c0_i32, %c0_i32_0 : i32, i32
  }
  func.func @transform_2(%arg0: i32) -> (i32, i32) {
    %c0_i32 = arith.constant 0 : i32
    %c0_i32_0 = arith.constant 0 : i32
    %c0_i32_1 = arith.constant 0 : i32
    return %c0_i32, %c0_i32_0 : i32, i32
  }
  func.func @transform_3(%arg0: i32) -> (i32, i32) {
    %c0_i32 = arith.constant 0 : i32
    %c0_i32_0 = arith.constant 0 : i32
    return %arg0, %c0_i32 : i32, i32
  }
}

module attributes {stable_mosaic.version = 11 : i64} {
  func.func @_matmul_bias_act_kernel(%arg0: i32, %arg1: memref<8x640xbf16, #tpu.memory_space<vmem>>, %arg2: memref<640x128xbf16, #tpu.memory_space<vmem>>, %arg3: memref<1x128xf32, #tpu.memory_space<vmem>>, %arg4: memref<8x128xbf16, #tpu.memory_space<vmem>>) attributes {dimension_semantics = [#tpu.dimension_semantics<parallel>], iteration_bounds = array<i64: 1>, scalar_prefetch = 0 : i64, scratch_operands = 0 : i64, tpu.core_type = #tpu.core_type<tc>, window_params = [{transform_indices = @transform_0, window_bounds = array<i64: 8, 640>}, {pipeline_mode = #tpu.pipeline_mode<synchronous>, transform_indices = @transform_1, window_bounds = array<i64: 640, 128>}, {pipeline_mode = #tpu.pipeline_mode<synchronous>, transform_indices = @transform_2, window_bounds = array<i64: 1, 128>}, {transform_indices = @transform_3, window_bounds = array<i64: 8, 128>}]} {
    %c0 = arith.constant 0 : index
    %c0_0 = arith.constant 0 : index
    %0 = vector.load %arg1[%c0, %c0_0] : memref<8x640xbf16, #tpu.memory_space<vmem>>, vector<8x640xbf16>
    %c0_1 = arith.constant 0 : index
    %c0_2 = arith.constant 0 : index
    %1 = vector.load %arg2[%c0_1, %c0_2] : memref<640x128xbf16, #tpu.memory_space<vmem>>, vector<640x128xbf16>
    %cst = arith.constant dense<0.000000e+00> : vector<8x128xf32>
    %2 = tpu.matmul %0, %1, %cst {dimension_numbers = #tpu.dot_dimension_numbers<[1], [0], [0], [1], [0, 0, 1, 1], [], []>} : vector<8x640xbf16>, vector<640x128xbf16>, vector<8x128xf32> -> vector<8x128xf32>
    %c0_3 = arith.constant 0 : index
    %c0_4 = arith.constant 0 : index
    %3 = vector.load %arg3[%c0_3, %c0_4] : memref<1x128xf32, #tpu.memory_space<vmem>>, vector<1x128xf32>
    %4 = vector.broadcast %3 : vector<1x128xf32> to vector<8x128xf32>
    %5 = arith.addf %2, %4 : vector<8x128xf32>
    %cst_5 = arith.constant 0.000000e+00 : f32
    %6 = vector.broadcast %cst_5 : f32 to vector<8x128xf32>
    %7 = arith.maximumf %5, %6 : vector<8x128xf32>
    %8 = arith.truncf %7 : vector<8x128xf32> to vector<8x128xbf16>
    %c0_6 = arith.constant 0 : index
    %c0_7 = arith.constant 0 : index
    %9 = vector.load %arg4[%c0_6, %c0_7] : memref<8x128xbf16, #tpu.memory_space<vmem>>, vector<8x128xbf16>
    tpu.vector_store %arg4[%c0_6, %c0_7], %8 {strides = array<i32>} : memref<8x128xbf16, #tpu.memory_space<vmem>>, vector<8x128xbf16>,
    return
  }
  func.func @transform_0(%arg0: i32) -> (i32, i32) {
    %c0_i32 = arith.constant 0 : i32
    %c0_i32_0 = arith.constant 0 : i32
    return %arg0, %c0_i32 : i32, i32
  }
  func.func @transform_1(%arg0: i32) -> (i32, i32) {
    %c0_i32 = arith.constant 0 : i32
    %c0_i32_0 = arith.constant 0 : i32
    %c0_i32_1 = arith.constant 0 : i32
    return %c0_i32, %c0_i32_0 : i32, i32
  }
  func.func @transform_2(%arg0: i32) -> (i32, i32) {
    %c0_i32 = arith.constant 0 : i32
    %c0_i32_0 = arith.constant 0 : i32
    %c0_i32_1 = arith.constant 0 : i32
    return %c0_i32, %c0_i32_0 : i32, i32
  }
  func.func @transform_3(%arg0: i32) -> (i32, i32) {
    %c0_i32 = arith.constant 0 : i32
    %c0_i32_0 = arith.constant 0 : i32
    return %arg0, %c0_i32 : i32, i32
  }
}

module attributes {stable_mosaic.version = 11 : i64} {
  func.func @_fused_fc_kernel(%arg0: i32, %arg1: memref<8x128xbf16, #tpu.memory_space<vmem>>, %arg2: memref<128x512xbf16, #tpu.memory_space<vmem>>, %arg3: memref<1x512xf32, #tpu.memory_space<vmem>>, %arg4: memref<512x128xbf16, #tpu.memory_space<vmem>>, %arg5: memref<1x128xf32, #tpu.memory_space<vmem>>, %arg6: memref<8x128xf32, #tpu.memory_space<vmem>>) attributes {dimension_semantics = [#tpu.dimension_semantics<parallel>], iteration_bounds = array<i64: 1>, scalar_prefetch = 0 : i64, scratch_operands = 0 : i64, tpu.core_type = #tpu.core_type<tc>, window_params = [{transform_indices = @transform_0, window_bounds = array<i64: 8, 128>}, {pipeline_mode = #tpu.pipeline_mode<synchronous>, transform_indices = @transform_1, window_bounds = array<i64: 128, 512>}, {pipeline_mode = #tpu.pipeline_mode<synchronous>, transform_indices = @transform_2, window_bounds = array<i64: 1, 512>}, {pipeline_mode = #tpu.pipeline_mode<synchronous>, transform_indices = @transform_3, window_bounds = array<i64: 512, 128>}, {pipeline_mode = #tpu.pipeline_mode<synchronous>, transform_indices = @transform_4, window_bounds = array<i64: 1, 128>}, {transform_indices = @transform_5, window_bounds = array<i64: 8, 128>}]} {
    %c0 = arith.constant 0 : index
    %c0_0 = arith.constant 0 : index
    %0 = vector.load %arg1[%c0, %c0_0] : memref<8x128xbf16, #tpu.memory_space<vmem>>, vector<8x128xbf16>
    %c0_1 = arith.constant 0 : index
    %c0_2 = arith.constant 0 : index
    %1 = vector.load %arg2[%c0_1, %c0_2] : memref<128x512xbf16, #tpu.memory_space<vmem>>, vector<128x512xbf16>
    %cst = arith.constant dense<0.000000e+00> : vector<8x512xf32>
    %2 = tpu.matmul %0, %1, %cst {dimension_numbers = #tpu.dot_dimension_numbers<[1], [0], [0], [1], [0, 0, 1, 1], [], []>} : vector<8x128xbf16>, vector<128x512xbf16>, vector<8x512xf32> -> vector<8x512xf32>
    %c0_3 = arith.constant 0 : index
    %c0_4 = arith.constant 0 : index
    %3 = vector.load %arg3[%c0_3, %c0_4] : memref<1x512xf32, #tpu.memory_space<vmem>>, vector<1x512xf32>
    %4 = vector.broadcast %3 : vector<1x512xf32> to vector<8x512xf32>
    %5 = arith.addf %2, %4 : vector<8x512xf32>
    %cst_5 = arith.constant 0.000000e+00 : f32
    %6 = vector.broadcast %cst_5 : f32 to vector<8x512xf32>
    %7 = arith.maximumf %5, %6 : vector<8x512xf32>
    %8 = arith.truncf %7 : vector<8x512xf32> to vector<8x512xbf16>
    %c0_6 = arith.constant 0 : index
    %c0_7 = arith.constant 0 : index
    %9 = vector.load %arg4[%c0_6, %c0_7] : memref<512x128xbf16, #tpu.memory_space<vmem>>, vector<512x128xbf16>
    %cst_8 = arith.constant dense<0.000000e+00> : vector<8x128xf32>
    %10 = tpu.matmul %8, %9, %cst_8 {dimension_numbers = #tpu.dot_dimension_numbers<[1], [0], [0], [1], [0, 0, 1, 1], [], []>} : vector<8x512xbf16>, vector<512x128xbf16>, vector<8x128xf32> -> vector<8x128xf32>
    %c0_9 = arith.constant 0 : index
    %c0_10 = arith.constant 0 : index
    %11 = vector.load %arg5[%c0_9, %c0_10] : memref<1x128xf32, #tpu.memory_space<vmem>>, vector<1x128xf32>
    %12 = vector.broadcast %11 : vector<1x128xf32> to vector<8x128xf32>
    %13 = arith.addf %10, %12 : vector<8x128xf32>
    %c0_11 = arith.constant 0 : index
    %c0_12 = arith.constant 0 : index
    %14 = vector.load %arg6[%c0_11, %c0_12] : memref<8x128xf32, #tpu.memory_space<vmem>>, vector<8x128xf32>
    tpu.vector_store %arg6[%c0_11, %c0_12], %13 {strides = array<i32>} : memref<8x128xf32, #tpu.memory_space<vmem>>, vector<8x128xf32>,
    return
  }
  func.func @transform_0(%arg0: i32) -> (i32, i32) {
    %c0_i32 = arith.constant 0 : i32
    %c0_i32_0 = arith.constant 0 : i32
    return %arg0, %c0_i32 : i32, i32
  }
  func.func @transform_1(%arg0: i32) -> (i32, i32) {
    %c0_i32 = arith.constant 0 : i32
    %c0_i32_0 = arith.constant 0 : i32
    %c0_i32_1 = arith.constant 0 : i32
    return %c0_i32, %c0_i32_0 : i32, i32
  }
  func.func @transform_2(%arg0: i32) -> (i32, i32) {
    %c0_i32 = arith.constant 0 : i32
    %c0_i32_0 = arith.constant 0 : i32
    %c0_i32_1 = arith.constant 0 : i32
    return %c0_i32, %c0_i32_0 : i32, i32
  }
  func.func @transform_3(%arg0: i32) -> (i32, i32) {
    %c0_i32 = arith.constant 0 : i32
    %c0_i32_0 = arith.constant 0 : i32
    %c0_i32_1 = arith.constant 0 : i32
    return %c0_i32, %c0_i32_0 : i32, i32
  }
  func.func @transform_4(%arg0: i32) -> (i32, i32) {
    %c0_i32 = arith.constant 0 : i32
    %c0_i32_0 = arith.constant 0 : i32
    %c0_i32_1 = arith.constant 0 : i32
    return %c0_i32, %c0_i32_0 : i32, i32
  }
  func.func @transform_5(%arg0: i32) -> (i32, i32) {
    %c0_i32 = arith.constant 0 : i32
    %c0_i32_0 = arith.constant 0 : i32
    return %arg0, %c0_i32 : i32, i32
  }
}

</mosaic_0001>

<bundles_post_ra>
// kernel: cnn_dqn_forward.4
= control target key start
LH: loop header
LB: loop body
LE: loop exit
PB: predicated region body
PF: predicated region fallthrough
CT: control target
= control target key end

     0   :  { %s836_s1 = inlined_call_operand.vmem [shape: bf16[256,128], index: 1, kind: input, shape index: {}]   ;;  %s837_s0 = inlined_call_operand.vmem [shape: bf16[128,256], index: 0, kind: input, shape index: {}]   ;;  %s838_s2 = inlined_call_operand.vmem [shape: f32[1,128], index: 2, kind: input, shape index: {}]   ;;  %s839_s3 = inlined_call_operand.vmem [shape: bf16[128,128], index: 3, kind: output, shape index: {}]  }
   0x1   :  { %v635_v0 = vld [vmem:[%s836_s1 + $0x40] sm:$0xff]   ;;  %v637_v2 = vld [vmem:[%s836_s1 + $0x48] sm:$0xff]   ;;  %v639_v4 = vld [vmem:[%s836_s1 + $0x50] sm:$0xff]  }
   0x2   :  { %v636_v1 = vld [vmem:[%s836_s1] sm:$0xff]   ;;  %555 = vmatprep.subr.bf16.mxu0 %v635_v0  ;;  %619 = vmatprep.subr.bf16.mxu1 %v635_v0  ;;  %v638_v3 = vld [vmem:[%s836_s1 + $0x8] sm:$0xff]   ;;  %v640_v5 = vld [vmem:[%s836_s1 + $0x10] sm:$0xff]  }
   0x3   :  { %556 = vmatpush3.bf16.msra.mxu0 %v636_v1  ;;  %627 = vmatpush3.bf16.msra.mxu1 %v636_v1  ;;  %v641_v6 = vld [vmem:[%s836_s1 + $0x58] sm:$0xff]   ;;  %v643_v8 = vld [vmem:[%s836_s1 + $0x60] sm:$0xff]   ;;  %v645_v10 = vld [vmem:[%s836_s1 + $0x68] sm:$0xff]  }
   0x4   :  { %557 = vmatprep.subr.bf16.mxu0 %v637_v2  ;;  %620 = vmatprep.subr.bf16.mxu1 %v637_v2  ;;  %v642_v7 = vld [vmem:[%s836_s1 + $0x18] sm:$0xff]   ;;  %v644_v9 = vld [vmem:[%s836_s1 + $0x20] sm:$0xff]   ;;  %v646_v13 = vld [vmem:[%s836_s1 + $0x28] sm:$0xff]  }
   0x5   :  { %v653_v11 = vld [vmem:[%s837_s0 + $0x4] ss:$8 sps:$4 sm:$0xff]   ;;  %v647_v14 = vld [vmem:[%s836_s1 + $0x70] sm:$0xff]   ;;  %v649_v16 = vld [vmem:[%s836_s1 + $0x78] sm:$0xff]  }
   0x6   :  { %v656_v12 = vld [vmem:[%s837_s0 + $0x44] ss:$8 sps:$4 sm:$0xff]   ;;  %278 = vmatprep.mubr.bf16.mxu0 %v653_v11  ;;  %v648_v15 = vld [vmem:[%s836_s1 + $0x30] sm:$0xff]   ;;  %v650_v17 = vld [vmem:[%s836_s1 + $0x38] sm:$0xff]  }
   0x7   :  { %558 = vmatpush3.bf16.msra.mxu0 %v638_v3  ;;  %628 = vmatpush3.bf16.msra.mxu1 %v638_v3  ;;  %v651_v18 = vld [vmem:[%s837_s0] ss:$8 sps:$4 sm:$0xff]   ;;  %v657_v20 = vld [vmem:[%s837_s0 + $0x14] ss:$8 sps:$4 sm:$0xff]   ;;  %v661_v22 = vld [vmem:[%s837_s0 + $0x10] ss:$8 sps:$4 sm:$0xff]  }
   0x8   :  { %559 = vmatprep.subr.bf16.mxu0 %v639_v4  ;;  %621 = vmatprep.subr.bf16.mxu1 %v639_v4  ;;  %v654_v19 = vld [vmem:[%s837_s0 + $0x40] ss:$8 sps:$4 sm:$0xff]   ;;  %v659_v21 = vld [vmem:[%s837_s0 + $0x54] ss:$8 sps:$4 sm:$0xff]   ;;  %v662_v23 = vld [vmem:[%s837_s0 + $0x50] ss:$8 sps:$4 sm:$0xff]  }
   0x9   :  { %310 = vmatprep.mubr.bf16.mxu1 %v656_v12  ;;  %v663_v24 = vld [vmem:[%s837_s0 + $0x24] ss:$8 sps:$4 sm:$0xff]   ;;  %v667_v26 = vld [vmem:[%s837_s0 + $0x20] ss:$8 sps:$4 sm:$0xff]   ;;  %v669_v28 = vld [vmem:[%s837_s0 + $0x34] ss:$8 sps:$4 sm:$0xff]  }
   0xa   :  { %v665_v25 = vld [vmem:[%s837_s0 + $0x64] ss:$8 sps:$4 sm:$0xff]   ;;  %v668_v27 = vld [vmem:[%s837_s0 + $0x60] ss:$8 sps:$4 sm:$0xff]   ;;  %v671_v29 = vld [vmem:[%s837_s0 + $0x74] ss:$8 sps:$4 sm:$0xff]  }
   0xb   :  { %560 = vmatpush3.bf16.msra.mxu0 %v640_v5  ;;  %629 = vmatpush3.bf16.msra.mxu1 %v640_v5  ;;  %v673_v30 = vld [vmem:[%s837_s0 + $0x30] ss:$8 sps:$4 sm:$0xff]   ;;  %v794_v34 = vld [vmem:[%s838_s2] ss:$0 sm:$0xff] }
   0xc   :  { %561 = vmatprep.subr.bf16.mxu0 %v641_v6  ;;  %622 = vmatprep.subr.bf16.mxu1 %v641_v6  ;;  %v674_v31 = vld [vmem:[%s837_s0 + $0x70] ss:$8 sps:$4 sm:$0xff]  }
   0xf   :  { %562 = vmatpush3.bf16.msra.mxu0 %v642_v7  ;;  %630 = vmatpush3.bf16.msra.mxu1 %v642_v7 }
  0x10   :  { %563 = vmatprep.subr.bf16.mxu0 %v643_v8  ;;  %623 = vmatprep.subr.bf16.mxu1 %v643_v8 }
  0x13   :  { %564 = vmatpush3.bf16.msra.mxu0 %v644_v9  ;;  %631 = vmatpush3.bf16.msra.mxu1 %v644_v9 }
  0x14   :  { %565 = vmatprep.subr.bf16.mxu0 %v645_v10  ;;  %624 = vmatprep.subr.bf16.mxu1 %v645_v10 }
  0x17   :  { %566 = vmatpush3.bf16.msra.mxu0 %v646_v13  ;;  %632 = vmatpush3.bf16.msra.mxu1 %v646_v13 }
  0x18   :  { %567 = vmatprep.subr.bf16.mxu0 %v647_v14  ;;  %625 = vmatprep.subr.bf16.mxu1 %v647_v14 }
  0x1b   :  { %568 = vmatpush3.bf16.msra.mxu0 %v648_v15  ;;  %633 = vmatpush3.bf16.msra.mxu1 %v648_v15 }
  0x1c   :  { %569 = vmatprep.subr.bf16.mxu0 %v649_v16  ;;  %626 = vmatprep.subr.bf16.mxu1 %v649_v16 }
  0x1f   :  { %570 = vmatpush3.bf16.msra.mxu0 %v650_v17  ;;  %634 = vmatpush3.bf16.msra.mxu1 %v650_v17 }
  0x22   :  { %279 = vmatmul.mubr.bf16.vlgmr.msra.gmra.mrb[0].mxu0 %v651_v18  ;;  %311 = vmatmul.mubr.bf16.vlgmr.msra.gmra.mrb[0].mxu1 %v654_v19 }
  0x23   :  { %286 = vmatprep.mubr.bf16.mxu0 %v657_v20  ;;  %318 = vmatprep.mubr.bf16.mxu1 %v659_v21 }
  0x2a   :  { %287 = vmatmul.mubr.bf16.gmra.mrb[4].mxu0 %v661_v22  ;;  %319 = vmatmul.mubr.bf16.gmra.mrb[4].mxu1 %v662_v23 }
  0x2b   :  { %294 = vmatprep.mubr.bf16.mxu0 %v663_v24  ;;  %326 = vmatprep.mubr.bf16.mxu1 %v665_v25 }
  0x32   :  { %295 = vmatmul.mubr.bf16.gmra.mrb[8].mxu0 %v667_v26  ;;  %327 = vmatmul.mubr.bf16.gmra.mrb[8].mxu1 %v668_v27 }
  0x33   :  { %302 = vmatprep.mubr.bf16.mxu0 %v669_v28  ;;  %334 = vmatprep.mubr.bf16.mxu1 %v671_v29 }
  0x3a   :  { %303 = vmatmul.mubr.bf16.gmra.mrb[12].mxu0 %v673_v30  ;;  %335 = vmatmul.mubr.bf16.gmra.mrb[12].mxu1 %v674_v31 }
  0xf5   :  { %v571_v32 = vpop.f32.mrb[0].mxu0  ;;  %v595_v33 = vpop.f32.mrb[0].mxu1 }
  0xf6   :  { %v572_v35 = vpop.f32.mrb[1].mxu0  ;;  %v596_v36 = vpop.f32.mrb[1].mxu1 }
  0xf7   :  { %v573_v37 = vadd.f32 %v572_v35, %v571_v32  ;;  %v597_v38 = vadd.f32 %v596_v36, %v595_v33  ;;  %v574_v39 = vpop.f32.mrb[2].mxu0  ;;  %v598_v40 = vpop.f32.mrb[2].mxu1 }
  0xf8   :  { %v575_v41 = vpop.f32.mrb[3].mxu0  ;;  %v599_v42 = vpop.f32.mrb[3].mxu1 }
  0xf9   :  { %v281_v43 = vadd.f32 %v573_v37, %v794_v34  ;;  %v313_v44 = vadd.f32 %v597_v38, %v794_v34  ;;  %v576_v45 = vadd.f32 %v575_v41, %v574_v39  ;;  %v600_v46 = vadd.f32 %v599_v42, %v598_v40 }
  0xfb   :  { %v284_v47 = vadd.f32 %v576_v45, %v794_v34  ;;  %v316_v48 = vadd.f32 %v600_v46, %v794_v34  ;;  %v343_v49 = vmax.f32 %v281_v43, 0.0  ;;  %v351_v50 = vmax.f32 %v313_v44, 0.0 }
  0xfd   :  { %v344_v51 = vmax.f32 %v284_v47, 0.0  ;;  %v352_v52 = vmax.f32 %v316_v48, 0.0  ;;  %v577_v53 = vpop.f32.mrb[4].mxu0  ;;  %v601_v54 = vpop.f32.mrb[4].mxu1 }
  0xfe   :  { %v578_v55 = vpop.f32.mrb[5].mxu0  ;;  %v602_v56 = vpop.f32.mrb[5].mxu1 }
  0xff   :  { %v511_v57 = vpack.c.bf16 %v344_v51, %v343_v49  ;;  %v531_v58 = vpack.c.bf16 %v352_v52, %v351_v50  ;;  %v579_v59 = vadd.f32 %v578_v55, %v577_v53  ;;  %v603_v60 = vadd.f32 %v602_v56, %v601_v54  ;;  %v580_v61 = vpop.f32.mrb[6].mxu0  ;;  %v604_v62 = vpop.f32.mrb[6].mxu1 }
 0x100   :  { %v581_v63 = vpop.f32.mrb[7].mxu0  ;;  %v605_v0 = vpop.f32.mrb[7].mxu1 }
 0x101   :  { %512 = vst [vmem:[%s839_s3] sm:$0xff] %v511_v57   ;;  %551 = vst [vmem:[%s839_s3 + $0x20] sm:$0xff] %v531_v58   ;;  %v289_v1 = vadd.f32 %v579_v59, %v794_v34  ;;  %v321_v2 = vadd.f32 %v603_v60, %v794_v34  ;;  %v582_v3 = vadd.f32 %v581_v63, %v580_v61 }
 0x102   :  { %v606_v4 = vadd.f32 %v605_v0, %v604_v62 }
 0x103   :  { %v292_v5 = vadd.f32 %v582_v3, %v794_v34  ;;  %v345_v7 = vmax.f32 %v289_v1, 0.0  ;;  %v353_v8 = vmax.f32 %v321_v2, 0.0 }
 0x104   :  { %v324_v6 = vadd.f32 %v606_v4, %v794_v34 }
 0x105   :  { %v346_v9 = vmax.f32 %v292_v5, 0.0  ;;  %v583_v11 = vpop.f32.mrb[8].mxu0  ;;  %v607_v12 = vpop.f32.mrb[8].mxu1 }
 0x106   :  { %v354_v10 = vmax.f32 %v324_v6, 0.0  ;;  %v584_v13 = vpop.f32.mrb[9].mxu0  ;;  %v608_v14 = vpop.f32.mrb[9].mxu1 }
 0x107   :  { %v516_v15 = vpack.c.bf16 %v346_v9, %v345_v7  ;;  %v585_v17 = vadd.f32 %v584_v13, %v583_v11  ;;  %v609_v18 = vadd.f32 %v608_v14, %v607_v12  ;;  %v586_v19 = vpop.f32.mrb[10].mxu0  ;;  %v610_v20 = vpop.f32.mrb[10].mxu1 }
 0x108   :  { %v536_v16 = vpack.c.bf16 %v354_v10, %v353_v8  ;;  %v587_v21 = vpop.f32.mrb[11].mxu0  ;;  %v611_v22 = vpop.f32.mrb[11].mxu1 }
 0x109   :  { %548 = vst [vmem:[%s839_s3 + $0x8] sm:$0xff] %v516_v15   ;;  %v297_v23 = vadd.f32 %v585_v17, %v794_v34  ;;  %v329_v24 = vadd.f32 %v609_v18, %v794_v34  ;;  %v588_v25 = vadd.f32 %v587_v21, %v586_v19  ;;  %v612_v26 = vadd.f32 %v611_v22, %v610_v20 }
 0x10a   :  { %552 = vst [vmem:[%s839_s3 + $0x28] sm:$0xff] %v536_v16  }
 0x10b   :  { %v300_v27 = vadd.f32 %v588_v25, %v794_v34  ;;  %v332_v28 = vadd.f32 %v612_v26, %v794_v34  ;;  %v347_v29 = vmax.f32 %v297_v23, 0.0  ;;  %v355_v30 = vmax.f32 %v329_v24, 0.0 }
 0x10d   :  { %v348_v31 = vmax.f32 %v300_v27, 0.0  ;;  %v356_v32 = vmax.f32 %v332_v28, 0.0  ;;  %v589_v33 = vpop.f32.mrb[12].mxu0  ;;  %v613_v35 = vpop.f32.mrb[12].mxu1 }
 0x10e   :  { %v590_v36 = vpop.f32.mrb[13].mxu0  ;;  %v614_v37 = vpop.f32.mrb[13].mxu1 }
 0x10f   :  { %v521_v38 = vpack.c.bf16 %v348_v31, %v347_v29  ;;  %v541_v39 = vpack.c.bf16 %v356_v32, %v355_v30  ;;  %v591_v40 = vadd.f32 %v590_v36, %v589_v33  ;;  %v615_v41 = vadd.f32 %v614_v37, %v613_v35  ;;  %v592_v42 = vpop.f32.mrb[14].mxu0  ;;  %v616_v43 = vpop.f32.mrb[14].mxu1 }
 0x110   :  { %v593_v44 = vpop.f32.mrb[15].mxu0  ;;  %v617_v45 = vpop.f32.mrb[15].mxu1 }
 0x111   :  { %549 = vst [vmem:[%s839_s3 + $0x10] sm:$0xff] %v521_v38   ;;  %553 = vst [vmem:[%s839_s3 + $0x30] sm:$0xff] %v541_v39   ;;  %v305_v46 = vadd.f32 %v591_v40, %v794_v34  ;;  %v337_v47 = vadd.f32 %v615_v41, %v794_v34  ;;  %v594_v48 = vadd.f32 %v593_v44, %v592_v42 }
 0x112   :  { %v618_v49 = vadd.f32 %v617_v45, %v616_v43 }
 0x113   :  { %v308_v50 = vadd.f32 %v594_v48, %v794_v34  ;;  %v349_v52 = vmax.f32 %v305_v46, 0.0  ;;  %v357_v53 = vmax.f32 %v337_v47, 0.0 }
 0x114   :  { %v340_v51 = vadd.f32 %v618_v49, %v794_v34 }
 0x115   :  { %v350_v54 = vmax.f32 %v308_v50, 0.0 }
 0x116   :  { %v358_v55 = vmax.f32 %v340_v51, 0.0 }
 0x117   :  { %v526_v56 = vpack.c.bf16 %v350_v54, %v349_v52 }
 0x118   :  { %v546_v57 = vpack.c.bf16 %v358_v55, %v357_v53 }
 0x119   :  { %550 = vst [vmem:[%s839_s3 + $0x18] sm:$0xff] %v526_v56  }
 0x11a   :  { %554 = vst [vmem:[%s839_s3 + $0x38] sm:$0xff] %v546_v57  }

// kernel: cnn_dqn_forward.5
= control target key start
LH: loop header
LB: loop body
LE: loop exit
PB: predicated region body
PF: predicated region fallthrough
CT: control target
= control target key end

     0   :  { %s730_s1 = inlined_call_operand.vmem [shape: bf16[512,128], index: 1, kind: input, shape index: {}]   ;;  %s731_s0 = inlined_call_operand.vmem [shape: bf16[24,512], index: 0, kind: input, shape index: {}]   ;;  %s732_s2 = inlined_call_operand.vmem [shape: f32[1,128], index: 2, kind: input, shape index: {}]   ;;  %s733_s3 = inlined_call_operand.vmem [shape: bf16[24,128], index: 3, kind: output, shape index: {}]  }
   0x1   :  { %v545_v0 = vld [vmem:[%s730_s1 + $0x40] sm:$0xff]   ;;  %v549_v4 = vld [vmem:[%s730_s1 + $0x48] sm:$0xff]   ;;  %v553_v8 = vld [vmem:[%s730_s1 + $0x50] sm:$0xff]  }
   0x2   :  { %v546_v1 = vld [vmem:[%s730_s1 + $0xc0] sm:$0xff]   ;;  %489 = vmatprep.subr.bf16.mxu0 %v545_v0  ;;  %v550_v5 = vld [vmem:[%s730_s1 + $0xc8] sm:$0xff]   ;;  %v554_v9 = vld [vmem:[%s730_s1 + $0xd0] sm:$0xff]  }
   0x3   :  { %v547_v2 = vld [vmem:[%s730_s1] sm:$0xff]   ;;  %517 = vmatprep.subr.bf16.mxu1 %v546_v1  ;;  %v551_v6 = vld [vmem:[%s730_s1 + $0x8] sm:$0xff]   ;;  %v555_v10 = vld [vmem:[%s730_s1 + $0x10] sm:$0xff]  }
   0x4   :  { %v548_v3 = vld [vmem:[%s730_s1 + $0x80] sm:$0xff]   ;;  %490 = vmatpush3.bf16.msra.mxu0 %v547_v2  ;;  %v552_v7 = vld [vmem:[%s730_s1 + $0x88] sm:$0xff]   ;;  %v556_v11 = vld [vmem:[%s730_s1 + $0x90] sm:$0xff]  }
   0x5   :  { %518 = vmatpush3.bf16.msra.mxu1 %v548_v3  ;;  %491 = vmatprep.subr.bf16.mxu0 %v549_v4  ;;  %v557_v12 = vld [vmem:[%s730_s1 + $0x58] sm:$0xff]   ;;  %v561_v16 = vld [vmem:[%s730_s1 + $0x60] sm:$0xff]   ;;  %v565_v20 = vld [vmem:[%s730_s1 + $0x68] sm:$0xff]  }
   0x6   :  { %519 = vmatprep.subr.bf16.mxu1 %v550_v5  ;;  %v558_v13 = vld [vmem:[%s730_s1 + $0xd8] sm:$0xff]   ;;  %v562_v17 = vld [vmem:[%s730_s1 + $0xe0] sm:$0xff]   ;;  %v566_v21 = vld [vmem:[%s730_s1 + $0xe8] sm:$0xff]  }
   0x7   :  { %v559_v14 = vld [vmem:[%s730_s1 + $0x18] sm:$0xff]   ;;  %v563_v18 = vld [vmem:[%s730_s1 + $0x20] sm:$0xff]   ;;  %v567_v22 = vld [vmem:[%s730_s1 + $0x28] sm:$0xff]  }
   0x8   :  { %492 = vmatpush3.bf16.msra.mxu0 %v551_v6  ;;  %v560_v15 = vld [vmem:[%s730_s1 + $0x98] sm:$0xff]   ;;  %v564_v19 = vld [vmem:[%s730_s1 + $0xa0] sm:$0xff]   ;;  %v568_v23 = vld [vmem:[%s730_s1 + $0xa8] sm:$0xff]  }
   0x9   :  { %520 = vmatpush3.bf16.msra.mxu1 %v552_v7  ;;  %493 = vmatprep.subr.bf16.mxu0 %v553_v8  ;;  %v569_v24 = vld [vmem:[%s730_s1 + $0x70] sm:$0xff]   ;;  %v573_v28 = vld [vmem:[%s730_s1 + $0x78] sm:$0xff]   ;;  %v19_v36 = vld [vmem:[%s731_s0 + $0x20] sm:$0xff] }
   0xa   :  { %521 = vmatprep.subr.bf16.mxu1 %v554_v9  ;;  %v570_v25 = vld [vmem:[%s730_s1 + $0xf0] sm:$0xff]   ;;  %v574_v29 = vld [vmem:[%s730_s1 + $0xf8] sm:$0xff]   ;;  %v443_v37 = vcombine.high %v19_v36, %v19_v36  ;;  %v20_v38 = vld [vmem:[%s731_s0 + $0x28] sm:$0xff]  ;;  %v442_v40 = vcombine.low %v19_v36, %v19_v36 }
   0xb   :  { %v571_v26 = vld [vmem:[%s730_s1 + $0x30] sm:$0xff]   ;;  %v575_v30 = vld [vmem:[%s730_s1 + $0x38] sm:$0xff]   ;;  %v445_v39 = vcombine.high %v20_v38, %v20_v38  ;;  %v444_v41 = vcombine.low %v20_v38, %v20_v38  ;;  %v437_v44 = vld [vmem:[%s732_s2] ss:$0 sm:$0xff] }
   0xc   :  { %494 = vmatpush3.bf16.msra.mxu0 %v555_v10  ;;  %v572_v27 = vld [vmem:[%s730_s1 + $0xb0] sm:$0xff]   ;;  %v576_v31 = vld [vmem:[%s730_s1 + $0xb8] sm:$0xff]  }
   0xd   :  { %522 = vmatpush3.bf16.msra.mxu1 %v556_v11  ;;  %495 = vmatprep.subr.bf16.mxu0 %v557_v12  ;;  %v577_v32 = vld [vmem:[%s731_s0] ss:$16 sps:$4 sm:$0xff]   ;;  %v579_v33 = vld [vmem:[%s731_s0 + $0x4] ss:$16 sps:$4 sm:$0xff]   ;;  %v580_v34 = vld [vmem:[%s731_s0 + $0x8] ss:$16 sps:$4 sm:$0xff]  }
   0xe   :  { %523 = vmatprep.subr.bf16.mxu1 %v558_v13  ;;  %v582_v35 = vld [vmem:[%s731_s0 + $0xc] ss:$16 sps:$4 sm:$0xff]   ;;  %350 = vmatprep.mubr.bf16.mxu0 %v579_v33 }
   0xf   :  { %398 = vmatprep.mubr.bf16.mxu1 %v582_v35 }
  0x10   :  { %496 = vmatpush3.bf16.msra.mxu0 %v559_v14 }
  0x11   :  { %524 = vmatpush3.bf16.msra.mxu1 %v560_v15  ;;  %497 = vmatprep.subr.bf16.mxu0 %v561_v16 }
  0x12   :  { %525 = vmatprep.subr.bf16.mxu1 %v562_v17 }
  0x14   :  { %498 = vmatpush3.bf16.msra.mxu0 %v563_v18 }
  0x15   :  { %526 = vmatpush3.bf16.msra.mxu1 %v564_v19  ;;  %499 = vmatprep.subr.bf16.mxu0 %v565_v20 }
  0x16   :  { %527 = vmatprep.subr.bf16.mxu1 %v566_v21 }
  0x18   :  { %500 = vmatpush3.bf16.msra.mxu0 %v567_v22 }
  0x19   :  { %528 = vmatpush3.bf16.msra.mxu1 %v568_v23  ;;  %501 = vmatprep.subr.bf16.mxu0 %v569_v24 }
  0x1a   :  { %529 = vmatprep.subr.bf16.mxu1 %v570_v25 }
  0x1c   :  { %502 = vmatpush3.bf16.msra.mxu0 %v571_v26 }
  0x1d   :  { %530 = vmatpush3.bf16.msra.mxu1 %v572_v27  ;;  %503 = vmatprep.subr.bf16.mxu0 %v573_v28 }
  0x1e   :  { %531 = vmatprep.subr.bf16.mxu1 %v574_v29 }
  0x20   :  { %504 = vmatpush3.bf16.msra.mxu0 %v575_v30 }
  0x21   :  { %532 = vmatpush3.bf16.msra.mxu1 %v576_v31 }
  0x23   :  { %351 = vmatmul.mubr.bf16.vlgmr.msra.gmra.mrb[0].mxu0 %v577_v32 }
  0x24   :  { %399 = vmatmul.mubr.bf16.vlgmr.msra.gmra.mrb[0].mxu1 %v580_v34  ;;  %358 = vmatprep.mubr.bf16.mxu0 %v443_v37 }
  0x25   :  { %406 = vmatprep.mubr.bf16.mxu1 %v445_v39 }
  0x2b   :  { %359 = vmatmul.mubr.bf16.gmra.mrb[4].mxu0 %v442_v40 }
  0x2c   :  { %407 = vmatmul.mubr.bf16.gmra.mrb[4].mxu1 %v444_v41 }
  0xf6   :  { %v505_v42 = vpop.f32.mrb[0].mxu0 }
  0xf7   :  { %v533_v43 = vpop.f32.mrb[0].mxu1  ;;  %v506_v45 = vpop.f32.mrb[1].mxu0 }
  0xf8   :  { %v507_v46 = vadd.f32 %v506_v45, %v505_v42  ;;  %v534_v47 = vpop.f32.mrb[1].mxu1  ;;  %v508_v48 = vpop.f32.mrb[2].mxu0 }
  0xf9   :  { %v535_v49 = vadd.f32 %v534_v47, %v533_v43  ;;  %v536_v50 = vpop.f32.mrb[2].mxu1  ;;  %v509_v51 = vpop.f32.mrb[3].mxu0 }
  0xfa   :  { %v353_v52 = vadd.f32 %v507_v46, %v437_v44  ;;  %v510_v53 = vadd.f32 %v509_v51, %v508_v48  ;;  %v537_v54 = vpop.f32.mrb[3].mxu1 }
  0xfb   :  { %v538_v55 = vadd.f32 %v537_v54, %v536_v50 }
  0xfc   :  { %v401_v56 = vadd.f32 %v535_v49, %v353_v52  ;;  %v356_v57 = vadd.f32 %v510_v53, %v437_v44 }
  0xfe   :  { %v404_v58 = vadd.f32 %v538_v55, %v356_v57  ;;  %v511_v59 = vpop.f32.mrb[4].mxu0  ;;  %v414_v62 = vmax.f32 %v401_v56, 0.0 }
  0xff   :  { %v539_v60 = vpop.f32.mrb[4].mxu1  ;;  %v512_v61 = vpop.f32.mrb[5].mxu0 }
 0x100   :  { %v415_v63 = vmax.f32 %v404_v58, 0.0  ;;  %v513_v0 = vadd.f32 %v512_v61, %v511_v59  ;;  %v540_v1 = vpop.f32.mrb[5].mxu1  ;;  %v514_v2 = vpop.f32.mrb[6].mxu0 }
 0x101   :  { %v541_v3 = vadd.f32 %v540_v1, %v539_v60  ;;  %v542_v4 = vpop.f32.mrb[6].mxu1  ;;  %v515_v5 = vpop.f32.mrb[7].mxu0 }
 0x102   :  { %v487_v6 = vpack.c.bf16 %v415_v63, %v414_v62  ;;  %v361_v7 = vadd.f32 %v513_v0, %v437_v44  ;;  %v543_v8 = vpop.f32.mrb[7].mxu1 }
 0x104   :  { %v409_v9 = vadd.f32 %v541_v3, %v361_v7  ;;  %488 = vst [vmem:[%s733_s3] sm:$0xff] %v487_v6  }
 0x106   :  { %v416_v10 = vmax.f32 %v409_v9, 0.0 }
 0x108   :  { %v483_v11 = vpack.c.bf16 %v416_v10, %v416_v10 }
 0x10a   :  { %432 = vst [vmem:[%s733_s3 + $0x8] sm:$0xf] %v483_v11 }

// kernel: cnn_dqn_forward.6
= control target key start
LH: loop header
LB: loop body
LE: loop exit
PB: predicated region body
PF: predicated region fallthrough
CT: control target
= control target key end

     0   :  { %v656_v35 = vmov 0.0   ;;  %vm657_vm0 = vmmov 0   ;;  %s813_s1 = inlined_call_operand.vmem [shape: bf16[640,128], index: 1, kind: input, shape index: {}]   ;;  %s814_s0 = inlined_call_operand.vmem [shape: bf16[8,640], index: 0, kind: input, shape index: {}]   ;;  %s815_s2 = inlined_call_operand.vmem [shape: f32[1,128], index: 2, kind: input, shape index: {}]   ;;  %s816_s3 = inlined_call_operand.vmem [shape: bf16[8,128], index: 3, kind: output, shape index: {}]  }
   0x1   :  { %v611_v0 = vld [vmem:[%s813_s1 + $0x40] sm:$0xff]   ;;  %v615_v4 = vld [vmem:[%s813_s1 + $0x48] sm:$0xff]   ;;  %v619_v8 = vld [vmem:[%s813_s1 + $0x50] sm:$0xff]  }
   0x2   :  { %v612_v1 = vld [vmem:[%s813_s1] sm:$0xff]   ;;  %536 = vmatprep.subr.bf16.mxu0 %v611_v0  ;;  %v616_v5 = vld [vmem:[%s813_s1 + $0x8] sm:$0xff]   ;;  %v620_v9 = vld [vmem:[%s813_s1 + $0x10] sm:$0xff]  }
   0x3   :  { %v613_v2 = vld [vmem:[%s813_s1 + $0xc0] sm:$0xff]   ;;  %537 = vmatpush3.bf16.msra.mxu0 %v612_v1  ;;  %v617_v6 = vld [vmem:[%s813_s1 + $0xc8] sm:$0xff]   ;;  %v621_v10 = vld [vmem:[%s813_s1 + $0xd0] sm:$0xff]  }
   0x4   :  { %v614_v3 = vld [vmem:[%s813_s1 + $0x80] sm:$0xff]   ;;  %558 = vmatprep.subr.bf16.mxu1 %v613_v2  ;;  %538 = vmatprep.subr.bf16.mxu0 %v615_v4  ;;  %v618_v7 = vld [vmem:[%s813_s1 + $0x88] sm:$0xff]   ;;  %v622_v11 = vld [vmem:[%s813_s1 + $0x90] sm:$0xff]  }
   0x5   :  { %559 = vmatpush3.bf16.msra.mxu1 %v614_v3  ;;  %v623_v12 = vld [vmem:[%s813_s1 + $0x58] sm:$0xff]   ;;  %v627_v16 = vld [vmem:[%s813_s1 + $0x60] sm:$0xff]   ;;  %v631_v20 = vld [vmem:[%s813_s1 + $0x68] sm:$0xff]  }
   0x6   :  { %560 = vmatprep.subr.bf16.mxu1 %v617_v6  ;;  %v624_v13 = vld [vmem:[%s813_s1 + $0x18] sm:$0xff]   ;;  %v628_v17 = vld [vmem:[%s813_s1 + $0x20] sm:$0xff]   ;;  %v632_v21 = vld [vmem:[%s813_s1 + $0x28] sm:$0xff]  }
   0x7   :  { %539 = vmatpush3.bf16.msra.mxu0 %v616_v5  ;;  %v625_v14 = vld [vmem:[%s813_s1 + $0xd8] sm:$0xff]   ;;  %v629_v18 = vld [vmem:[%s813_s1 + $0xe0] sm:$0xff]   ;;  %v633_v22 = vld [vmem:[%s813_s1 + $0xe8] sm:$0xff]  }
   0x8   :  { %540 = vmatprep.subr.bf16.mxu0 %v619_v8  ;;  %v626_v15 = vld [vmem:[%s813_s1 + $0x98] sm:$0xff]   ;;  %v630_v19 = vld [vmem:[%s813_s1 + $0xa0] sm:$0xff]   ;;  %v634_v23 = vld [vmem:[%s813_s1 + $0xa8] sm:$0xff]  }
   0x9   :  { %561 = vmatpush3.bf16.msra.mxu1 %v618_v7  ;;  %v635_v24 = vld [vmem:[%s813_s1 + $0x70] sm:$0xff]   ;;  %v639_v28 = vld [vmem:[%s813_s1 + $0x78] sm:$0xff]   ;;  %v15_v31 = vld [vmem:[%s814_s0] sm:$0xff] }
   0xa   :  { %562 = vmatprep.subr.bf16.mxu1 %v621_v10  ;;  %v636_v25 = vld [vmem:[%s813_s1 + $0x30] sm:$0xff]   ;;  %v640_v29 = vld [vmem:[%s813_s1 + $0x38] sm:$0xff]   ;;  %v491_v32 = vcombine.low %v15_v31, %v15_v31  ;;  %v492_v33 = vcombine.high %v15_v31, %v15_v31  ;;  %v16_v36 = vld [vmem:[%s814_s0 + $0x8] sm:$0xff] }
   0xb   :  { %541 = vmatpush3.bf16.msra.mxu0 %v620_v9  ;;  %v637_v26 = vld [vmem:[%s813_s1 + $0xf0] sm:$0xff]   ;;  %v641_v30 = vld [vmem:[%s813_s1 + $0xf8] sm:$0xff]   ;;  %v493_v37 = vcombine.low %v16_v36, %v16_v36  ;;  %v494_v38 = vcombine.high %v16_v36, %v16_v36  ;;  %v648_v39 = vld [vmem:[%s813_s1 + $0x100] sm:$0xff]  }
   0xc   :  { %542 = vmatprep.subr.bf16.mxu0 %v623_v12  ;;  %v638_v27 = vld [vmem:[%s813_s1 + $0xb0] sm:$0xff]   ;;  %v645_v34 = vld [vmem:[%s813_s1 + $0xb8] sm:$0xff]   ;;  %395 = vmatprep.mubr.bf16.mxu0 %v492_v33  ;;  %v649_v40 = vld [vmem:[%s813_s1 + $0x108] sm:$0xff]  }
   0xd   :  { %563 = vmatpush3.bf16.msra.mxu1 %v622_v11  ;;  %435 = vmatprep.mubr.bf16.mxu1 %v494_v38  ;;  %v650_v41 = vld [vmem:[%s813_s1 + $0x110] sm:$0xff]   ;;  %v651_v42 = vld [vmem:[%s813_s1 + $0x118] sm:$0xff]   ;;  %v652_v43 = vld [vmem:[%s813_s1 + $0x120] sm:$0xff]  }
   0xe   :  { %564 = vmatprep.subr.bf16.mxu1 %v625_v14  ;;  %v653_v44 = vld [vmem:[%s813_s1 + $0x128] sm:$0xff]   ;;  %v654_v45 = vld [vmem:[%s813_s1 + $0x130] sm:$0xff]   ;;  %v655_v46 = vld [vmem:[%s813_s1 + $0x138] sm:$0xff]  }
   0xf   :  { %543 = vmatpush3.bf16.msra.mxu0 %v624_v13  ;;  %v644_v47 = vld [vmem:[%s814_s0 + $0x10] ss:$0 sps:$4 sm:$0xff]   ;;  %v490_v49 = vld [vmem:[%s815_s2] ss:$0 sm:$0xff] }
  0x10   :  { %544 = vmatprep.subr.bf16.mxu0 %v627_v16 }
  0x11   :  { %565 = vmatpush3.bf16.msra.mxu1 %v626_v15 }
  0x12   :  { %566 = vmatprep.subr.bf16.mxu1 %v629_v18 }
  0x13   :  { %545 = vmatpush3.bf16.msra.mxu0 %v628_v17 }
  0x14   :  { %546 = vmatprep.subr.bf16.mxu0 %v631_v20 }
  0x15   :  { %567 = vmatpush3.bf16.msra.mxu1 %v630_v19 }
  0x16   :  { %568 = vmatprep.subr.bf16.mxu1 %v633_v22 }
  0x17   :  { %547 = vmatpush3.bf16.msra.mxu0 %v632_v21 }
  0x18   :  { %548 = vmatprep.subr.bf16.mxu0 %v635_v24 }
  0x19   :  { %569 = vmatpush3.bf16.msra.mxu1 %v634_v23 }
  0x1a   :  { %570 = vmatprep.subr.bf16.mxu1 %v637_v26 }
  0x1b   :  { %549 = vmatpush3.bf16.msra.mxu0 %v636_v25 }
  0x1c   :  { %550 = vmatprep.subr.bf16.mxu0 %v639_v28 }
  0x1d   :  { %571 = vmatpush3.bf16.msra.mxu1 %v638_v27 }
  0x1e   :  { %572 = vmatprep.subr.bf16.mxu1 %v641_v30 }
  0x1f   :  { %551 = vmatpush3.bf16.msra.mxu0 %v640_v29 }
  0x20   :  { %589 = vmatprep.subr.bf16.mxu0 %v656_v35 }
  0x21   :  { %573 = vmatpush3.bf16.msra.mxu1 %v645_v34 }
  0x22   :  { %396 = vmatmul.mubr.bf16.vlgmr.msra.gmra.mrb[0].mxu0 %v491_v32 }
  0x23   :  { %590 = vmatpush3.bf16.msra.mxu0 %v648_v39  ;;  %605 = vmatprep.mubr.msk.bf16.mxu0 %vm657_vm0, %v656_v35 }
  0x24   :  { %436 = vmatmul.mubr.bf16.vlgmr.msra.gmra.mrb[0].mxu1 %v493_v37  ;;  %591 = vmatprep.subr.bf16.mxu0 %v656_v35 }
  0x27   :  { %592 = vmatpush3.bf16.msra.mxu0 %v649_v40 }
  0x28   :  { %593 = vmatprep.subr.bf16.mxu0 %v656_v35 }
  0x2b   :  { %594 = vmatpush3.bf16.msra.mxu0 %v650_v41 }
  0x2c   :  { %595 = vmatprep.subr.bf16.mxu0 %v656_v35 }
  0x2f   :  { %596 = vmatpush3.bf16.msra.mxu0 %v651_v42 }
  0x30   :  { %597 = vmatprep.subr.bf16.mxu0 %v656_v35 }
  0x33   :  { %598 = vmatpush3.bf16.msra.mxu0 %v652_v43 }
  0x34   :  { %599 = vmatprep.subr.bf16.mxu0 %v656_v35 }
  0x37   :  { %600 = vmatpush3.bf16.msra.mxu0 %v653_v44 }
  0x38   :  { %601 = vmatprep.subr.bf16.mxu0 %v656_v35 }
  0x3b   :  { %602 = vmatpush3.bf16.msra.mxu0 %v654_v45 }
  0x3c   :  { %603 = vmatprep.subr.bf16.mxu0 %v656_v35 }
  0x3f   :  { %604 = vmatpush3.bf16.msra.mxu0 %v655_v46 }
  0x42   :  { %606 = vmatmul.mubr.bf16.vlgmr.msra.gmra.mrb[4].mxu0 %v644_v47 }
  0xf5   :  { %v552_v48 = vpop.f32.mrb[0].mxu0 }
  0xf6   :  { %v553_v50 = vpop.f32.mrb[1].mxu0 }
  0xf7   :  { %v554_v51 = vadd.f32 %v553_v50, %v552_v48  ;;  %v555_v52 = vpop.f32.mrb[2].mxu0  ;;  %v574_v53 = vpop.f32.mrb[0].mxu1 }
  0xf8   :  { %v556_v54 = vpop.f32.mrb[3].mxu0  ;;  %v575_v55 = vpop.f32.mrb[1].mxu1 }
  0xf9   :  { %v398_v56 = vadd.f32 %v554_v51, %v490_v49  ;;  %v576_v57 = vadd.f32 %v575_v55, %v574_v53  ;;  %v577_v58 = vpop.f32.mrb[2].mxu1 }
  0xfa   :  { %v578_v59 = vpop.f32.mrb[3].mxu1 }
  0xfb   :  { %v438_v60 = vadd.f32 %v576_v57, %v398_v56 }
 0x115   :  { %v477_v61 = vpop.f32.mrb[4].mxu0 }
 0x116   :  { %v478_v62 = vadd.f32 %v477_v61, %v438_v60  ;;  %v607_v63 = vpop.f32.mrb[5].mxu0 }
 0x117   :  { %v480_v0 = vpop.f32.mrb[6].mxu0 }
 0x118   :  { %v483_v1 = vmax.f32 %v478_v62, 0.0  ;;  %v608_v2 = vpop.f32.mrb[7].mxu0 }
 0x11a   :  { %v484_v3 = vpack.c.bf16 %v483_v1, %v483_v1 }
 0x11c   :  { %485 = vst [vmem:[%s816_s3] sm:$0xf] %v484_v3 }

// kernel: cnn_dqn_forward.7
= control target key start
LH: loop header
LB: loop body
LE: loop exit
PB: predicated region body
PF: predicated region fallthrough
CT: control target
= control target key end

     0   :  { %v864_v1 = vmov 0   ;;  %s1099_s1 = inlined_call_operand.vmem [shape: bf16[128,512], index: 1, kind: input, shape index: {}]   ;;  %s1100_s3 = inlined_call_operand.vmem [shape: bf16[512,128], index: 3, kind: input, shape index: {}]   ;;  %s1101_s0 = inlined_call_operand.vmem [shape: bf16[8,128], index: 0, kind: input, shape index: {}]   ;;  %s1102_s2 = inlined_call_operand.vmem [shape: f32[1,512], index: 2, kind: input, shape index: {}]   ;;  %s1103_s4 = inlined_call_operand.vmem [shape: f32[1,128], index: 4, kind: input, shape index: {}]   ;;  %s1104_s5 = inlined_call_operand.vmem [shape: f32[8,128], index: 5, kind: output, shape index: {}]  }
   0x1   :  { %v784_v0 = vld [vmem:[%s1099_s1 + $0x4] ss:$16 sps:$4 sm:$0xff]   ;;  %268 = vmatprep.mubr.bf16.mxu0 %v864_v1  ;;  %309 = vmatprep.mubr.bf16.mxu1 %v864_v1  ;;  %v786_v2 = vld [vmem:[%s1099_s1 + $0xc] ss:$16 sps:$4 sm:$0xff]   ;;  %v788_v3 = vld [vmem:[%s1099_s1] ss:$16 sps:$4 sm:$0xff]  }
   0x2   :  { %236 = vmatprep.subr.bf16.mxu0 %v784_v0  ;;  %v789_v4 = vld [vmem:[%s1099_s1 + $0x8] ss:$16 sps:$4 sm:$0xff]   ;;  %277 = vmatprep.subr.bf16.mxu1 %v786_v2  ;;  %v790_v5 = vld [vmem:[%s1099_s1 + $0x24] ss:$16 sps:$4 sm:$0xff]   ;;  %v792_v6 = vld [vmem:[%s1099_s1 + $0x2c] ss:$16 sps:$4 sm:$0xff]   ;;  %v56_v2 = vlaneseq }
   0x3   :  { %237 = vmatpush1.bf16.msra.mxu0 %v788_v3  ;;  %278 = vmatpush1.bf16.msra.mxu1 %v789_v4  ;;  %v794_v7 = vld [vmem:[%s1099_s1 + $0x20] ss:$16 sps:$4 sm:$0xff]   ;;  %v795_v8 = vld [vmem:[%s1099_s1 + $0x28] ss:$16 sps:$4 sm:$0xff]   ;;  %v796_v9 = vld [vmem:[%s1099_s1 + $0x44] ss:$16 sps:$4 sm:$0xff]  }
   0x4   :  { %238 = vmatprep.subr.bf16.mxu0 %v790_v5  ;;  %279 = vmatprep.subr.bf16.mxu1 %v792_v6  ;;  %v798_v10 = vld [vmem:[%s1099_s1 + $0x4c] ss:$16 sps:$4 sm:$0xff]   ;;  %v800_v11 = vld [vmem:[%s1099_s1 + $0x40] ss:$16 sps:$4 sm:$0xff]   ;;  %v801_v12 = vld [vmem:[%s1099_s1 + $0x48] ss:$16 sps:$4 sm:$0xff]  }
   0x5   :  { %v802_v13 = vld [vmem:[%s1099_s1 + $0x64] ss:$16 sps:$4 sm:$0xff]   ;;  %v804_v14 = vld [vmem:[%s1099_s1 + $0x6c] ss:$16 sps:$4 sm:$0xff]   ;;  %v806_v15 = vld [vmem:[%s1099_s1 + $0x60] ss:$16 sps:$4 sm:$0xff]  }
   0x6   :  { %v807_v16 = vld [vmem:[%s1099_s1 + $0x68] ss:$16 sps:$4 sm:$0xff]   ;;  %v808_v17 = vld [vmem:[%s1099_s1 + $0x84] ss:$16 sps:$4 sm:$0xff]   ;;  %v810_v18 = vld [vmem:[%s1099_s1 + $0x8c] ss:$16 sps:$4 sm:$0xff]  }
   0x7   :  { %239 = vmatpush1.bf16.msra.mxu0 %v794_v7  ;;  %280 = vmatpush1.bf16.msra.mxu1 %v795_v8  ;;  %v812_v19 = vld [vmem:[%s1099_s1 + $0x80] ss:$16 sps:$4 sm:$0xff]   ;;  %v813_v20 = vld [vmem:[%s1099_s1 + $0x88] ss:$16 sps:$4 sm:$0xff]   ;;  %v814_v21 = vld [vmem:[%s1099_s1 + $0xa4] ss:$16 sps:$4 sm:$0xff]  }
   0x8   :  { %240 = vmatprep.subr.bf16.mxu0 %v796_v9  ;;  %281 = vmatprep.subr.bf16.mxu1 %v798_v10  ;;  %v816_v22 = vld [vmem:[%s1099_s1 + $0xac] ss:$16 sps:$4 sm:$0xff]   ;;  %v818_v23 = vld [vmem:[%s1099_s1 + $0xa0] ss:$16 sps:$4 sm:$0xff]   ;;  %v819_v24 = vld [vmem:[%s1099_s1 + $0xa8] ss:$16 sps:$4 sm:$0xff]  }
   0x9   :  { %v820_v25 = vld [vmem:[%s1099_s1 + $0xc4] ss:$16 sps:$4 sm:$0xff]   ;;  %v822_v26 = vld [vmem:[%s1099_s1 + $0xcc] ss:$16 sps:$4 sm:$0xff]   ;;  %v824_v27 = vld [vmem:[%s1099_s1 + $0xc0] ss:$16 sps:$4 sm:$0xff]  }
   0xa   :  { %v825_v28 = vld [vmem:[%s1099_s1 + $0xc8] ss:$16 sps:$4 sm:$0xff]   ;;  %v826_v29 = vld [vmem:[%s1099_s1 + $0xe4] ss:$16 sps:$4 sm:$0xff]   ;;  %v828_v30 = vld [vmem:[%s1099_s1 + $0xec] ss:$16 sps:$4 sm:$0xff]  }
   0xb   :  { %241 = vmatpush1.bf16.msra.mxu0 %v800_v11  ;;  %282 = vmatpush1.bf16.msra.mxu1 %v801_v12  ;;  %v830_v31 = vld [vmem:[%s1099_s1 + $0xe0] ss:$16 sps:$4 sm:$0xff]   ;;  %v831_v32 = vld [vmem:[%s1099_s1 + $0xe8] ss:$16 sps:$4 sm:$0xff]   ;;  %v57_v3 = vshrl.u32 %v56_v2, 7 }
   0xc   :  { %242 = vmatprep.subr.bf16.mxu0 %v802_v13  ;;  %283 = vmatprep.subr.bf16.mxu1 %v804_v14  ;;  %v832_v33 = vld [vmem:[%s1100_s3 + $0x40] sm:$0xff]   ;;  %v836_v38 = vld [vmem:[%s1100_s3 + $0x48] sm:$0xff]   ;;  %v840_v42 = vld [vmem:[%s1100_s3 + $0x50] sm:$0xff]  }
   0xd   :  { %v833_v34 = vld [vmem:[%s1100_s3 + $0xc0] sm:$0xff]   ;;  %v837_v39 = vld [vmem:[%s1100_s3 + $0xc8] sm:$0xff]   ;;  %v841_v43 = vld [vmem:[%s1100_s3 + $0xd0] sm:$0xff]   ;;  %v58_v4 = vsub.s32 0, %v57_v3  ;;  %v66_v5 = vsub.s32 2, %v57_v3  ;;  %v62_v7 = vsub.s32 1, %v57_v3 }
   0xe   :  { %v21_v35 = vld [vmem:[%s1101_s0] sm:$0xf]  ;;  %v838_v40 = vld [vmem:[%s1100_s3 + $0x8] sm:$0xff]   ;;  %v842_v44 = vld [vmem:[%s1100_s3 + $0x10] sm:$0xff]   ;;  %v70_v8 = vsub.s32 3, %v57_v3 }
   0xf   :  { %243 = vmatpush1.bf16.msra.mxu0 %v806_v15  ;;  %284 = vmatpush1.bf16.msra.mxu1 %v807_v16  ;;  %v834_v36 = vld [vmem:[%s1100_s3] sm:$0xff]   ;;  %v839_v41 = vld [vmem:[%s1100_s3 + $0x88] sm:$0xff]   ;;  %v843_v45 = vld [vmem:[%s1100_s3 + $0x90] sm:$0xff]  }
  0x10   :  { %244 = vmatprep.subr.bf16.mxu0 %v808_v17  ;;  %285 = vmatprep.subr.bf16.mxu1 %v810_v18  ;;  %v835_v37 = vld [vmem:[%s1100_s3 + $0x80] sm:$0xff]   ;;  %v844_v46 = vld [vmem:[%s1100_s3 + $0x58] sm:$0xff]   ;;  %v852_v54 = vld [vmem:[%s1100_s3 + $0x68] sm:$0xff]  }
  0x11   :  { %v845_v47 = vld [vmem:[%s1100_s3 + $0xd8] sm:$0xff]   ;;  %v848_v50 = vld [vmem:[%s1100_s3 + $0x60] sm:$0xff]   ;;  %v853_v55 = vld [vmem:[%s1100_s3 + $0xe8] sm:$0xff]  }
  0x12   :  { %v846_v48 = vld [vmem:[%s1100_s3 + $0x18] sm:$0xff]   ;;  %v849_v51 = vld [vmem:[%s1100_s3 + $0xe0] sm:$0xff]   ;;  %v854_v56 = vld [vmem:[%s1100_s3 + $0x28] sm:$0xff]  }
  0x13   :  { %245 = vmatpush1.bf16.msra.mxu0 %v812_v19  ;;  %286 = vmatpush1.bf16.msra.mxu1 %v813_v20  ;;  %v847_v49 = vld [vmem:[%s1100_s3 + $0x98] sm:$0xff]   ;;  %v850_v52 = vld [vmem:[%s1100_s3 + $0x20] sm:$0xff]   ;;  %v855_v57 = vld [vmem:[%s1100_s3 + $0xa8] sm:$0xff]  }
  0x14   :  { %246 = vmatprep.subr.bf16.mxu0 %v814_v21  ;;  %287 = vmatprep.subr.bf16.mxu1 %v816_v22  ;;  %v851_v53 = vld [vmem:[%s1100_s3 + $0xa0] sm:$0xff]   ;;  %v856_v58 = vld [vmem:[%s1100_s3 + $0x70] sm:$0xff]   ;;  %v860_v62 = vld [vmem:[%s1100_s3 + $0x78] sm:$0xff]  }
  0x15   :  { %v857_v59 = vld [vmem:[%s1100_s3 + $0xf0] sm:$0xff]   ;;  %v861_v63 = vld [vmem:[%s1100_s3 + $0xf8] sm:$0xff]   ;;  %v54_v6 = vld [vmem:[%s1102_s2] sm:$0xf] }
  0x16   :  { %v858_v60 = vld [vmem:[%s1100_s3 + $0x30] sm:$0xff]   ;;  %v862_v0 = vld [vmem:[%s1100_s3 + $0x38] sm:$0xff]   ;;  %v59_v9 = vrot.slane %v54_v6, %v58_v4  ;;  %v67_v10 = vrot.slane %v54_v6, %v66_v5  ;;  %v63_v11 = vrot.slane %v54_v6, %v62_v7  ;;  %v71_v12 = vrot.slane %v54_v6, %v70_v8 }
  0x17   :  { %247 = vmatpush1.bf16.msra.mxu0 %v818_v23  ;;  %288 = vmatpush1.bf16.msra.mxu1 %v819_v24  ;;  %v859_v61 = vld [vmem:[%s1100_s3 + $0xb0] sm:$0xff]   ;;  %v863_v1 = vld [vmem:[%s1100_s3 + $0xb8] sm:$0xff]  }
  0x18   :  { %248 = vmatprep.subr.bf16.mxu0 %v820_v25  ;;  %289 = vmatprep.subr.bf16.mxu1 %v822_v26 }
  0x1b   :  { %249 = vmatpush1.bf16.msra.mxu0 %v824_v27  ;;  %290 = vmatpush1.bf16.msra.mxu1 %v825_v28 }
  0x1c   :  { %250 = vmatprep.subr.bf16.mxu0 %v826_v29  ;;  %291 = vmatprep.subr.bf16.mxu1 %v828_v30 }
  0x1f   :  { %251 = vmatpush1.bf16.msra.mxu0 %v830_v31  ;;  %292 = vmatpush1.bf16.msra.mxu1 %v831_v32 }
  0x20   :  { %739 = vmatprep.subr.bf16.mxu0 %v832_v33  ;;  %761 = vmatprep.subr.bf16.mxu1 %v833_v34 }
  0x22   :  { %269 = vmatmul.mubr.bf16.vlgmr.msra.gmra.mrb[0].mxu0 %v21_v35  ;;  %310 = vmatmul.mubr.bf16.vlgmr.msra.gmra.mrb[0].mxu1 %v21_v35  ;;  %v706_v35 = vld [vmem:[%s1103_s4] ss:$0 sm:$0xff] }
  0x23   :  { %740 = vmatpush3.bf16.msra.mxu0 %v834_v36  ;;  %762 = vmatpush3.bf16.msra.mxu1 %v835_v37 }
  0x24   :  { %741 = vmatprep.subr.bf16.mxu0 %v836_v38  ;;  %763 = vmatprep.subr.bf16.mxu1 %v837_v39 }
  0x27   :  { %742 = vmatpush3.bf16.msra.mxu0 %v838_v40  ;;  %764 = vmatpush3.bf16.msra.mxu1 %v839_v41 }
  0x28   :  { %743 = vmatprep.subr.bf16.mxu0 %v840_v42  ;;  %765 = vmatprep.subr.bf16.mxu1 %v841_v43 }
  0x2b   :  { %744 = vmatpush3.bf16.msra.mxu0 %v842_v44  ;;  %766 = vmatpush3.bf16.msra.mxu1 %v843_v45 }
  0x2c   :  { %745 = vmatprep.subr.bf16.mxu0 %v844_v46  ;;  %767 = vmatprep.subr.bf16.mxu1 %v845_v47 }
  0x2f   :  { %746 = vmatpush3.bf16.msra.mxu0 %v846_v48  ;;  %768 = vmatpush3.bf16.msra.mxu1 %v847_v49 }
  0x30   :  { %747 = vmatprep.subr.bf16.mxu0 %v848_v50  ;;  %769 = vmatprep.subr.bf16.mxu1 %v849_v51 }
  0x33   :  { %748 = vmatpush3.bf16.msra.mxu0 %v850_v52  ;;  %770 = vmatpush3.bf16.msra.mxu1 %v851_v53 }
  0x34   :  { %749 = vmatprep.subr.bf16.mxu0 %v852_v54  ;;  %771 = vmatprep.subr.bf16.mxu1 %v853_v55 }
  0x37   :  { %750 = vmatpush3.bf16.msra.mxu0 %v854_v56  ;;  %772 = vmatpush3.bf16.msra.mxu1 %v855_v57 }
  0x38   :  { %751 = vmatprep.subr.bf16.mxu0 %v856_v58  ;;  %773 = vmatprep.subr.bf16.mxu1 %v857_v59 }
  0x3b   :  { %752 = vmatpush3.bf16.msra.mxu0 %v858_v60  ;;  %774 = vmatpush3.bf16.msra.mxu1 %v859_v61 }
  0x3c   :  { %753 = vmatprep.subr.bf16.mxu0 %v860_v62  ;;  %775 = vmatprep.subr.bf16.mxu1 %v861_v63 }
  0x3f   :  { %754 = vmatpush3.bf16.msra.mxu0 %v862_v0  ;;  %776 = vmatpush3.bf16.msra.mxu1 %v863_v1 }
  0xf5   :  { %v270_v13 = vpop.f32.mrb[0].mxu0  ;;  %v311_v14 = vpop.f32.mrb[0].mxu1 }
  0xf6   :  { %v271_v15 = vadd.f32 %v270_v13, %v59_v9  ;;  %v312_v16 = vadd.f32 %v311_v14, %v67_v10  ;;  %v272_v17 = vpop.f32.mrb[1].mxu0  ;;  %v313_v18 = vpop.f32.mrb[1].mxu1 }
  0xf7   :  { %v273_v19 = vadd.f32 %v272_v17, %v63_v11  ;;  %v314_v20 = vadd.f32 %v313_v18, %v71_v12  ;;  %v274_v21 = vpop.f32.mrb[2].mxu0  ;;  %v315_v22 = vpop.f32.mrb[2].mxu1 }
  0xf8   :  { %v318_v23 = vmax.f32 %v271_v15, 0.0  ;;  %v320_v24 = vmax.f32 %v312_v16, 0.0  ;;  %v275_v25 = vpop.f32.mrb[3].mxu0  ;;  %v316_v26 = vpop.f32.mrb[3].mxu1 }
  0xf9   :  { %v319_v27 = vmax.f32 %v273_v19, 0.0  ;;  %v321_v28 = vmax.f32 %v314_v20, 0.0 }
  0xfa   :  { %v324_v29 = vpack.c.bf16 %v320_v24, %v320_v24  ;;  %v322_v32 = vpack.c.bf16 %v318_v23, %v318_v23 }
  0xfb   :  { %v323_v30 = vpack.c.bf16 %v319_v27, %v319_v27  ;;  %v325_v31 = vpack.c.bf16 %v321_v28, %v321_v28 }
  0xfd   :  { %621 = vmatprep.mubr.bf16.mxu0 %v323_v30  ;;  %661 = vmatprep.mubr.bf16.mxu1 %v325_v31 }
  0xfe   :  { %622 = vmatmul.mubr.bf16.vlgmr.msra.gmra.mrb[4].mxu0 %v322_v32  ;;  %662 = vmatmul.mubr.bf16.vlgmr.msra.gmra.mrb[4].mxu1 %v324_v29 }
 0x1d1   :  { %v755_v33 = vpop.f32.mrb[4].mxu0  ;;  %v777_v34 = vpop.f32.mrb[4].mxu1 }
 0x1d2   :  { %v756_v36 = vpop.f32.mrb[5].mxu0  ;;  %v778_v37 = vpop.f32.mrb[5].mxu1 }
 0x1d3   :  { %v757_v38 = vadd.f32 %v756_v36, %v755_v33  ;;  %v779_v39 = vadd.f32 %v778_v37, %v777_v34  ;;  %v758_v40 = vpop.f32.mrb[6].mxu0  ;;  %v780_v41 = vpop.f32.mrb[6].mxu1 }
 0x1d4   :  { %v759_v42 = vpop.f32.mrb[7].mxu0  ;;  %v781_v43 = vpop.f32.mrb[7].mxu1 }
 0x1d5   :  { %v624_v44 = vadd.f32 %v757_v38, %v706_v35 }
 0x1d7   :  { %v664_v45 = vadd.f32 %v779_v39, %v624_v44 }
 0x1d9   :  { %669 = vst [vmem:[%s1104_s5] sm:$0xff] %v664_v45 }

</bundles_post_ra>
